<compile_context>
chip_gen: v7x
topology: tpu7x:2x2x1
jax: 0.10.0
libtpu: 0.0.40
codegen_flags: <defaults>
</compile_context>

<pallas_src>
import functools

import jax
import jax.numpy as jnp
from jax.experimental import pallas as pl
from jax.experimental.pallas import tpu as pltpu


def _round_up(x: int, m: int) -> int:
    return ((x + m - 1) // m) * m


def _actor_kernel(x_ref, w1_ref, w2_ref, w3_ref, b_ref, o_ref, xpad_ref,
                  *, dim_state, h1p, h2p, ap):
    # x:    (TB, dim_state) f32   -- real (unpadded) feature width
    # w*:   bf16, zero-padded to 128-aligned dims, (in, out) layout
    # b:    (8, BW) f32, row0=b1, row1=b2, row2=b3
    # xpad: (TB, Dp) f32 VMEM scratch for the MXU-aligned layer-1 operand
    #
    # Zero-fill + copy the real features; padded lanes must be 0 (not stale
    # VMEM bits) so the first dot is exact.  Re-zeroed every step: cheap, and
    # megacore-safe (no reliance on program_id==0 running on every core).
    xpad_ref[...] = jnp.zeros_like(xpad_ref)
    xpad_ref[:, :dim_state] = x_ref[...]

    b = b_ref[...]
    b1 = b[0:1, :h1p]                   # (1, H1p)
    b2 = b[1:2, :h2p]                   # (1, H2p)   lane-aligned static slices
    b3 = b[2:3, :ap]                    # (1, Ap)

    # Layer 1 (MXU, bf16 in / f32 acc) + ReLU in f32.
    h1 = jnp.dot(xpad_ref[...].astype(jnp.bfloat16), w1_ref[...],
                 preferred_element_type=jnp.float32) + b1
    h1 = jnp.maximum(h1, 0.0)

    # Layer 2 + ReLU.
    h2 = jnp.dot(h1.astype(jnp.bfloat16), w2_ref[...],
                 preferred_element_type=jnp.float32) + b2
    h2 = jnp.maximum(h2, 0.0)

    # Layer 3 + Tanh (f32), writeback in bf16 (output is in [-1, 1]).
    out = jnp.dot(h2.astype(jnp.bfloat16), w3_ref[...],
                  preferred_element_type=jnp.float32) + b3
    o_ref[...] = jnp.tanh(out).astype(o_ref.dtype)


def prepare_actor_params(params):
    """Pad + cast params once (outside the per-call path).

    Weights -> bf16, (in, out) layout, zero-padded to 128-aligned dims
    (w1 is also K-padded so layer 1 can run as an aligned MXU dot).
    Biases  -> packed into a single (8, BW) f32 buffer, one per sublane row,
    with BW = max(H1p, H2p, Ap) so lane slices are always in bounds.
    """
    dim_state, h1 = params["w1"].shape
    h2 = params["w2"].shape[1]
    n_actions = params["w3"].shape[1]

    Dp = _round_up(dim_state, 128)
    H1p = _round_up(h1, 128)
    H2p = _round_up(h2, 128)
    Ap = _round_up(n_actions, 128)
    BW = max(H1p, H2p, Ap)

    def pad2(a, r, c, dtype):
        return jnp.zeros((r, c), dtype).at[: a.shape[0], : a.shape[1]].set(
            a.astype(dtype))

    w1_p = pad2(params["w1"], Dp, H1p, jnp.bfloat16)
    w2_p = pad2(params["w2"], H1p, H2p, jnp.bfloat16)
    w3_p = pad2(params["w3"], H2p, Ap, jnp.bfloat16)

    b_p = jnp.zeros((8, BW), jnp.float32)
    b_p = b_p.at[0, :h1].set(params["b1"].astype(jnp.float32))
    b_p = b_p.at[1, :h2].set(params["b2"].astype(jnp.float32))
    b_p = b_p.at[2, :n_actions].set(params["b3"].astype(jnp.float32))

    return {"w1": w1_p, "w2": w2_p, "w3": w3_p, "b": b_p}


def _pick_batch_tile(B: int):
    """Batch tile: multiple of 16; >=2 tiles of >=128 rows for large batches
    (feeds both v7x TensorCores, keeps v5e MXU rows full); cap 1024 rows."""
    bp_min = _round_up(B, 16)
    if bp_min <= 128:
        tb = bp_min                          # single small tile (inference path)
    else:
        tb = min(1024, _round_up(pl.cdiv(bp_min, 2), 128))
    bp = _round_up(bp_min, tb)
    return tb, bp


@functools.partial(jax.jit, static_argnames=("n_actions",))
def ddpg_actor_forward(state, prepared, n_actions):
    """Forward pass of DdpgActorNetwork via a fused, batch-tiled Pallas kernel.

    state:    (B, dim_state) float32
    prepared: output of prepare_actor_params (pre-padded bf16 weights, packed bias)
    returns   (B, n_actions) float32
    """
    B, dim_state = state.shape
    Dp, H1p = prepared["w1"].shape
    H2p = prepared["w2"].shape[1]
    Ap = prepared["w3"].shape[1]
    BW = prepared["b"].shape[1]

    TB, Bp = _pick_batch_tile(B)
    nb = Bp // TB

    # Only batch-row padding (tiny); NO lane padding / dtype cast in HBM.
    x = state.astype(jnp.float32)
    if Bp != B:
        x = jnp.zeros((Bp, dim_state), jnp.float32).at[:B].set(x)

    kernel = functools.partial(_actor_kernel, dim_state=dim_state,
                               h1p=H1p, h2p=H2p, ap=Ap)

    flops = 2 * Bp * (Dp * H1p + H1p * H2p + H2p * Ap)
    bytes_accessed = (Bp * dim_state * 4          # state read
                      + int(prepared["w1"].size) * 2
                      + int(prepared["w2"].size) * 2
                      + int(prepared["w3"].size) * 2
                      + int(prepared["b"].size) * 4
                      + Bp * Ap * 2)              # bf16 output write

    out_p = pl.pallas_call(
        kernel,
        out_shape=jax.ShapeDtypeStruct((Bp, Ap), jnp.bfloat16),
        grid=(nb,),
        in_specs=[
            pl.BlockSpec((TB, dim_state), lambda i: (i, 0)),  # x tile, real width
            pl.BlockSpec((Dp, H1p), lambda i: (0, 0)),        # w1 (VMEM-resident)
            pl.BlockSpec((H1p, H2p), lambda i: (0, 0)),       # w2 (VMEM-resident)
            pl.BlockSpec((H2p, Ap), lambda i: (0, 0)),        # w3 (VMEM-resident)
            pl.BlockSpec((8, BW), lambda i: (0, 0)),          # packed biases
        ],
        out_specs=pl.BlockSpec((TB, Ap), lambda i: (i, 0)),
        scratch_shapes=[pltpu.VMEM((TB, Dp), jnp.float32)],   # layer-1 operand pad
        compiler_params=pltpu.CompilerParams(
            dimension_semantics=("parallel",)),
        cost_estimate=pl.CostEstimate(
            flops=flops, transcendentals=Bp * Ap, bytes_accessed=bytes_accessed),
    )(x, prepared["w1"], prepared["w2"], prepared["w3"], prepared["b"])

    return out_p[:B, :n_actions].astype(jnp.float32)


def init_ddpg_actor_params(key, dim_state, n_actions,
                           first_layer_size=400, second_layer_size=200):
    """Init matching PyTorch nn.Linear's default U(-1/sqrt(fan_in), 1/sqrt(fan_in))
    scheme (distribution/shapes identical; RNG values differ from torch)."""
    keys = jax.random.split(key, 6)

    def linear(kw, kb, fan_in, fan_out):
        bound = 1.0 / jnp.sqrt(jnp.float32(fan_in))
        w = jax.random.uniform(kw, (fan_in, fan_out), jnp.float32, -bound, bound)
        b = jax.random.uniform(kb, (fan_out,), jnp.float32, -bound, bound)
        return w, b

    w1, b1 = linear(keys[0], keys[1], dim_state, first_layer_size)
    w2, b2 = linear(keys[2], keys[3], first_layer_size, second_layer_size)
    w3, b3 = linear(keys[4], keys[5], second_layer_size, n_actions)
    return {"w1": w1, "b1": b1, "w2": w2, "b2": b2, "w3": w3, "b3": b3}


def _reference_forward(state, params):
    h1 = jnp.maximum(state @ params["w1"] + params["b1"], 0.0)
    h2 = jnp.maximum(h1 @ params["w2"] + params["b2"], 0.0)
    return jnp.tanh(h2 @ params["w3"] + params["b3"])


if __name__ == "__main__":
    # Small shapes consistent with the module: batch=2, dim_state=8, n_actions=4.
    batch, dim_state, n_actions = 2, 8, 4

    key = jax.random.PRNGKey(0)
    k_params, k_state, k_state_big = jax.random.split(key, 3)

    params = init_ddpg_actor_params(k_params, dim_state, n_actions)
    prepared = prepare_actor_params(params)   # padded/bf16 once, reused per call

    state = jax.random.normal(k_state, (batch, dim_state), jnp.float32)
    out = jax.block_until_ready(
        ddpg_actor_forward(state, prepared, n_actions=n_actions))
    ref = _reference_forward(state, params)
    assert out.shape == (batch, n_actions), out.shape
    # bf16 matmul inputs + bf16 output writeback -> loosened tolerance vs f32 ref.
    assert jnp.allclose(out, ref, atol=3e-2, rtol=3e-2), (
        "Pallas kernel output mismatch vs reference (small batch)")

    # Larger (replay-buffer-like) batch exercises the multi-tile parallel grid.
    state_big = jax.random.normal(k_state_big, (512, dim_state), jnp.float32)
    out_big = jax.block_until_ready(
        ddpg_actor_forward(state_big, prepared, n_actions=n_actions))
    ref_big = _reference_forward(state_big, params)
    assert out_big.shape == (512, n_actions), out_big.shape
    assert jnp.allclose(out_big, ref_big, atol=3e-2, rtol=3e-2), (
        "Pallas kernel output mismatch vs reference (large batch)")

    print("KERNEL_OK")
</pallas_src>

<mosaic_0001>
module attributes {stable_mosaic.version = 11 : i64} {
  func.func @_actor_kernel(%arg0: i32, %arg1: memref<16x8xf32, #tpu.memory_space<vmem>>, %arg2: memref<128x512xbf16, #tpu.memory_space<vmem>>, %arg3: memref<512x256xbf16, #tpu.memory_space<vmem>>, %arg4: memref<256x128xbf16, #tpu.memory_space<vmem>>, %arg5: memref<8x512xf32, #tpu.memory_space<vmem>>, %arg6: memref<16x128xbf16, #tpu.memory_space<vmem>>, %arg7: memref<16x128xf32, #tpu.memory_space<vmem>>) attributes {dimension_semantics = [#tpu.dimension_semantics<parallel>], iteration_bounds = array<i64: 1>, scalar_prefetch = 0 : i64, scratch_operands = 1 : i64, tpu.core_type = #tpu.core_type<tc>, window_params = [{transform_indices = @transform_0, window_bounds = array<i64: 16, 8>}, {pipeline_mode = #tpu.pipeline_mode<synchronous>, transform_indices = @transform_1, window_bounds = array<i64: 128, 512>}, {pipeline_mode = #tpu.pipeline_mode<synchronous>, transform_indices = @transform_2, window_bounds = array<i64: 512, 256>}, {pipeline_mode = #tpu.pipeline_mode<synchronous>, transform_indices = @transform_3, window_bounds = array<i64: 256, 128>}, {pipeline_mode = #tpu.pipeline_mode<synchronous>, transform_indices = @transform_4, window_bounds = array<i64: 8, 512>}, {transform_indices = @transform_5, window_bounds = array<i64: 16, 128>}]} {
    %cst = arith.constant 0.000000e+00 : f32
    %0 = vector.broadcast %cst : f32 to vector<16x128xf32>
    %c0 = arith.constant 0 : index
    %c0_0 = arith.constant 0 : index
    %1 = vector.load %arg7[%c0, %c0_0] : memref<16x128xf32, #tpu.memory_space<vmem>>, vector<16x128xf32>
    tpu.vector_store %arg7[%c0, %c0_0], %0 {strides = array<i32>} : memref<16x128xf32, #tpu.memory_space<vmem>>, vector<16x128xf32>,
    %c0_1 = arith.constant 0 : index
    %c0_2 = arith.constant 0 : index
    %2 = vector.load %arg1[%c0_1, %c0_2] : memref<16x8xf32, #tpu.memory_space<vmem>>, vector<16x8xf32>
    %c0_3 = arith.constant 0 : index
    %c0_4 = arith.constant 0 : index
    %3 = vector.load %arg7[%c0_3, %c0_4] : memref<16x128xf32, #tpu.memory_space<vmem>>, vector<16x8xf32>
    tpu.vector_store %arg7[%c0_3, %c0_4], %2 {strides = array<i32>} : memref<16x128xf32, #tpu.memory_space<vmem>>, vector<16x8xf32>,
    %c0_5 = arith.constant 0 : index
    %c0_6 = arith.constant 0 : index
    %4 = vector.load %arg5[%c0_5, %c0_6] : memref<8x512xf32, #tpu.memory_space<vmem>>, vector<8x512xf32>
    %5 = vector.extract_strided_slice %4 {offsets = [0, 0], sizes = [1, 512], strides = [1, 1]} : vector<8x512xf32> to vector<1x512xf32>
    %6 = vector.extract_strided_slice %4 {offsets = [1, 0], sizes = [1, 256], strides = [1, 1]} : vector<8x512xf32> to vector<1x256xf32>
    %7 = vector.extract_strided_slice %4 {offsets = [2, 0], sizes = [1, 128], strides = [1, 1]} : vector<8x512xf32> to vector<1x128xf32>
    %c0_7 = arith.constant 0 : index
    %c0_8 = arith.constant 0 : index
    %8 = vector.load %arg7[%c0_7, %c0_8] : memref<16x128xf32, #tpu.memory_space<vmem>>, vector<16x128xf32>
    %9 = arith.truncf %8 : vector<16x128xf32> to vector<16x128xbf16>
    %c0_9 = arith.constant 0 : index
    %c0_10 = arith.constant 0 : index
    %10 = vector.load %arg2[%c0_9, %c0_10] : memref<128x512xbf16, #tpu.memory_space<vmem>>, vector<128x512xbf16>
    %cst_11 = arith.constant dense<0.000000e+00> : vector<16x512xf32>
    %11 = tpu.matmul %9, %10, %cst_11 {dimension_numbers = #tpu.dot_dimension_numbers<[1], [0], [0], [1], [0, 0, 1, 1], [], []>} : vector<16x128xbf16>, vector<128x512xbf16>, vector<16x512xf32> -> vector<16x512xf32>
    %12 = vector.broadcast %5 : vector<1x512xf32> to vector<16x512xf32>
    %13 = arith.addf %11, %12 : vector<16x512xf32>
    %cst_12 = arith.constant 0.000000e+00 : f32
    %14 = vector.broadcast %cst_12 : f32 to vector<16x512xf32>
    %15 = arith.maximumf %13, %14 : vector<16x512xf32>
    %16 = arith.truncf %15 : vector<16x512xf32> to vector<16x512xbf16>
    %c0_13 = arith.constant 0 : index
    %c0_14 = arith.constant 0 : index
    %17 = vector.load %arg3[%c0_13, %c0_14] : memref<512x256xbf16, #tpu.memory_space<vmem>>, vector<512x256xbf16>
    %cst_15 = arith.constant dense<0.000000e+00> : vector<16x256xf32>
    %18 = tpu.matmul %16, %17, %cst_15 {dimension_numbers = #tpu.dot_dimension_numbers<[1], [0], [0], [1], [0, 0, 1, 1], [], []>} : vector<16x512xbf16>, vector<512x256xbf16>, vector<16x256xf32> -> vector<16x256xf32>
    %19 = vector.broadcast %6 : vector<1x256xf32> to vector<16x256xf32>
    %20 = arith.addf %18, %19 : vector<16x256xf32>
    %cst_16 = arith.constant 0.000000e+00 : f32
    %21 = vector.broadcast %cst_16 : f32 to vector<16x256xf32>
    %22 = arith.maximumf %20, %21 : vector<16x256xf32>
    %23 = arith.truncf %22 : vector<16x256xf32> to vector<16x256xbf16>
    %c0_17 = arith.constant 0 : index
    %c0_18 = arith.constant 0 : index
    %24 = vector.load %arg4[%c0_17, %c0_18] : memref<256x128xbf16, #tpu.memory_space<vmem>>, vector<256x128xbf16>
    %cst_19 = arith.constant dense<0.000000e+00> : vector<16x128xf32>
    %25 = tpu.matmul %23, %24, %cst_19 {dimension_numbers = #tpu.dot_dimension_numbers<[1], [0], [0], [1], [0, 0, 1, 1], [], []>} : vector<16x256xbf16>, vector<256x128xbf16>, vector<16x128xf32> -> vector<16x128xf32>
    %26 = vector.broadcast %7 : vector<1x128xf32> to vector<16x128xf32>
    %27 = arith.addf %25, %26 : vector<16x128xf32>
    %28 = math.tanh %27 : vector<16x128xf32>
    %29 = arith.truncf %28 : vector<16x128xf32> to vector<16x128xbf16>
    %c0_20 = arith.constant 0 : index
    %c0_21 = arith.constant 0 : index
    %30 = vector.load %arg6[%c0_20, %c0_21] : memref<16x128xbf16, #tpu.memory_space<vmem>>, vector<16x128xbf16>
    tpu.vector_store %arg6[%c0_20, %c0_21], %29 {strides = array<i32>} : memref<16x128xbf16, #tpu.memory_space<vmem>>, vector<16x128xbf16>,
    return
  }
  func.func @transform_0(%arg0: i32) -> (i32, i32) {
    %c0_i32 = arith.constant 0 : i32
    %c0_i32_0 = arith.constant 0 : i32
    return %arg0, %c0_i32 : i32, i32
  }
  func.func @transform_1(%arg0: i32) -> (i32, i32) {
    %c0_i32 = arith.constant 0 : i32
    %c0_i32_0 = arith.constant 0 : i32
    %c0_i32_1 = arith.constant 0 : i32
    return %c0_i32, %c0_i32_0 : i32, i32
  }
  func.func @transform_2(%arg0: i32) -> (i32, i32) {
    %c0_i32 = arith.constant 0 : i32
    %c0_i32_0 = arith.constant 0 : i32
    %c0_i32_1 = arith.constant 0 : i32
    return %c0_i32, %c0_i32_0 : i32, i32
  }
  func.func @transform_3(%arg0: i32) -> (i32, i32) {
    %c0_i32 = arith.constant 0 : i32
    %c0_i32_0 = arith.constant 0 : i32
    %c0_i32_1 = arith.constant 0 : i32
    return %c0_i32, %c0_i32_0 : i32, i32
  }
  func.func @transform_4(%arg0: i32) -> (i32, i32) {
    %c0_i32 = arith.constant 0 : i32
    %c0_i32_0 = arith.constant 0 : i32
    %c0_i32_1 = arith.constant 0 : i32
    return %c0_i32, %c0_i32_0 : i32, i32
  }
  func.func @transform_5(%arg0: i32) -> (i32, i32) {
    %c0_i32 = arith.constant 0 : i32
    %c0_i32_0 = arith.constant 0 : i32
    return %arg0, %c0_i32 : i32, i32
  }
}

</mosaic_0001>

<bundles_post_ra>
// kernel: ddpg_actor_forward.1
= control target key start
LH: loop header
LB: loop body
LE: loop exit
PB: predicated region body
PF: predicated region fallthrough
CT: control target
= control target key end

     0   :  { %10 = vsyncpa [#allocation4], 0  ;;  %s1610_s0 = inlined_call_operand.vmem [shape: f32[16,8], index: 0, kind: input, shape index: {}]   ;;  %s1611_s1 = inlined_call_operand.hbm [shape: bf16[128,512], index: 1, kind: input, shape index: {}]   ;;  %s1612_s2 = inlined_call_operand.hbm [shape: bf16[512,256], index: 2, kind: input, shape index: {}]   ;;  %s1613_s3 = inlined_call_operand.hbm [shape: bf16[256,128], index: 3, kind: input, shape index: {}]   ;;  %s1614_s4 = inlined_call_operand.hbm [shape: f32[8,512], index: 4, kind: input, shape index: {}]   ;;  %s1615_s5 = inlined_call_operand.vmem [shape: bf16[16,128], index: 5, kind: output, shape index: {}]  }
   0x1   :  { %11 = vsyncpa [#allocation6], 0 }
   0x2   :  { %12 = vsyncpa [#allocation9], 0  ;;  %s1491_s18 = smov [#allocation5]   ;;  %s1397_s22 = scalar_lea.hbm %s1612_s2, 8192 }
   0x3   :  { %s32_s19 = sshll.u32 %s1491_s18, 4  ;;  %p1398_p0 = scmp.ne.s32.totalorder %s1612_s2, %s1397_s22  ;;  %s33_s19 = int_to_ptr.vmem [resolvable:$true] %s32_s19 }
   0x4   :  { %p1401_p1 = scmp.lt.u32.totalorder %s1397_s22, %s1612_s2 }
   0x6   :  { %p1403_p2 = pnand %p1401_p1, %p1398_p0 }
   0x8   :  { %1406 = shalt.err (!%p1403_p2)
}
   0x9   :  { %s1407_s27 = scalar_lea.vmem %s33_s19, 8192  ;;  %p1412_p4 = scmp.lt.s32.totalorder %s33_s19, %s33_s19 }
   0xa   :  { %p1408_p3 = scmp.ne.s32.totalorder %s33_s19, %s1407_s27  ;;  %p1413_p5 = scmp.lt.s32.totalorder %s1407_s27, %s1407_s27 }
   0xc   :  { %p1414_p6 = por %p1413_p5, %p1412_p4 }
   0xe   :  { %p1415_p7 = pnand %p1414_p6, %p1408_p3 }
  0x10   :  { %1418 = shalt.err (!%p1415_p7)
}
  0x11   :  { %s1492_s28 = smov 128   ;;  %s1493_s29 = smov 8  }
  0x12   :  { %38 = dma.hbm_to_vmem [thread:$0]  %s1612_s2, 8192, %s33_s19, [#allocation6], %s1492_s28, %s1492_s28, %s1493_s29  }
  0x13   :  { %s1494_s7 = smov [#allocation3]   ;;  %s1419_s11 = scalar_lea.hbm %s1611_s1, 4096 }
  0x14   :  { %s20_s8 = sshll.u32 %s1494_s7, 4  ;;  %p1420_p8 = scmp.ne.s32.totalorder %s1611_s1, %s1419_s11  ;;  %s21_s8 = int_to_ptr.vmem [resolvable:$true] %s20_s8 }
  0x15   :  { %p1423_p9 = scmp.lt.u32.totalorder %s1419_s11, %s1611_s1 }
  0x17   :  { %p1425_p10 = pnand %p1423_p9, %p1420_p8 }
  0x19   :  { %1428 = shalt.err (!%p1425_p10)
}
  0x1a   :  { %s1429_s16 = scalar_lea.vmem %s21_s8, 4096  ;;  %p1434_p12 = scmp.lt.s32.totalorder %s21_s8, %s21_s8 }
  0x1b   :  { %p1430_p11 = scmp.ne.s32.totalorder %s21_s8, %s1429_s16  ;;  %p1435_p13 = scmp.lt.s32.totalorder %s1429_s16, %s1429_s16 }
  0x1d   :  { %p1436_p0 = por %p1435_p13, %p1434_p12 }
  0x1f   :  { %p1437_p1 = pnand %p1436_p0, %p1430_p11 }
  0x21   :  { %1440 = shalt.err (!%p1437_p1)
}
  0x22   :  { %s1495_s2 = smov 256   ;;  %s1496_s17 = smov 16  }
  0x23   :  { %26 = dma.hbm_to_vmem [thread:$0]  %s1611_s1, 4096, %s21_s8, [#allocation4], %s1495_s2, %s1495_s2, %s1496_s17  }
  0x24   :  { %s1497_s20 = smov [#allocation7]   ;;  %s1441_s24 = scalar_lea.hbm %s1613_s3, 2048 }
  0x25   :  { %s44_s21 = sshll.u32 %s1497_s20, 4  ;;  %p1442_p2 = scmp.ne.s32.totalorder %s1613_s3, %s1441_s24  ;;  %s45_s21 = int_to_ptr.vmem [resolvable:$true] %s44_s21 }
  0x26   :  { %p1445_p3 = scmp.lt.u32.totalorder %s1441_s24, %s1613_s3 }
  0x28   :  { %p1447_p4 = pnand %p1445_p3, %p1442_p2 }
  0x2a   :  { %1450 = shalt.err (!%p1447_p4)
}
  0x2b   :  { %s1451_s29 = scalar_lea.vmem %s45_s21, 2048  ;;  %p1456_p6 = scmp.lt.s32.totalorder %s45_s21, %s45_s21 }
  0x2c   :  { %p1452_p5 = scmp.ne.s32.totalorder %s45_s21, %s1451_s29  ;;  %p1457_p7 = scmp.lt.s32.totalorder %s1451_s29, %s1451_s29 }
  0x2e   :  { %p1458_p8 = por %p1457_p7, %p1456_p6 }
  0x30   :  { %p1459_p9 = pnand %p1458_p8, %p1452_p5 }
  0x32   :  { %1462 = shalt.err (!%p1459_p9)
}
  0x33   :  { %s1498_s1 = smov 64   ;;  %s1499_s30 = smov 4  }
  0x34   :  { %50 = dma.hbm_to_vmem [thread:$0]  %s1613_s3, 2048, %s45_s21, [#allocation6], %s1498_s1, %s1498_s1, %s1499_s30  }
  0x35   :  { %s1500_s8 = smov [#allocation8]   ;;  %s1463_s12 = scalar_lea.hbm %s1614_s4, 512 }
  0x36   :  { %s57_s9 = sshll.u32 %s1500_s8, 4  ;;  %p1464_p10 = scmp.ne.s32.totalorder %s1614_s4, %s1463_s12  ;;  %s58_s9 = int_to_ptr.vmem [resolvable:$true] %s57_s9 }
  0x37   :  { %p1467_p11 = scmp.lt.u32.totalorder %s1463_s12, %s1614_s4 }
  0x39   :  { %p1469_p12 = pnand %p1467_p11, %p1464_p10 }
  0x3b   :  { %1472 = shalt.err (!%p1469_p12)
}
  0x3c   :  { %s1473_s2 = scalar_lea.vmem %s58_s9, 512  ;;  %p1478_p0 = scmp.lt.s32.totalorder %s58_s9, %s58_s9 }
  0x3d   :  { %p1474_p13 = scmp.ne.s32.totalorder %s58_s9, %s1473_s2  ;;  %p1479_p1 = scmp.lt.s32.totalorder %s1473_s2, %s1473_s2 }
  0x3f   :  { %p1480_p2 = por %p1479_p1, %p1478_p0 }
  0x41   :  { %p1481_p3 = pnand %p1480_p2, %p1474_p13 }
  0x43   :  { %1484 = shalt.err (!%p1481_p3)
}
  0x44   :  { %60 = dma.hbm_to_vmem [thread:$0]  %s1614_s4, 512, %s58_s9, [#allocation9]  }
  0x45   :  { %1485 = dma.done.wait [#allocation4], 4096  }
  0x46   :  { %1486 = vsyncadd [#allocation4], 4294963200 }
  0x47   :  { %1487 = dma.done.wait [#allocation6], 10240  }
  0x48   :  { %1488 = vsyncadd [#allocation6], 4294957056 }
  0x49   :  { %1489 = dma.done.wait [#allocation9], 512  }
  0x4a   :  { %1490 = vsyncadd [#allocation9], 4294966784  ;;  %v1501_v0 = vmov 0   ;;  %v1502_v1 = vmov 0.0   ;;  %v1233_v2 = vld [vmem:[#allocation3 + $0x4] ss:$16 sps:$4 sm:$0xff]  }
  0x4b   :  { %328 = vmatprep.mubr.bf16.mxu1 %v1501_v0  ;;  %74 = vst [vmem:[#allocation2] sm:$0xff] %v1502_v1  ;;  %75 = vst [vmem:[#allocation2 + $0x8] sm:$0xff] %v1502_v1  ;;  %v1235_v3 = vld [vmem:[#allocation3] ss:$16 sps:$4 sm:$0xff]   ;;  %296 = vmatprep.subr.bf16.mxu1 %v1233_v2  ;;  %v1236_v4 = vld [vmem:[#allocation3 + $0x24] ss:$16 sps:$4 sm:$0xff]  }
  0x4c   :  { %297 = vmatpush1.bf16.msra.mxu1 %v1235_v3  ;;  %v1238_v5 = vld [vmem:[#allocation3 + $0x20] ss:$16 sps:$4 sm:$0xff]   ;;  %v1239_v6 = vld [vmem:[#allocation3 + $0x44] ss:$16 sps:$4 sm:$0xff]   ;;  %vm78_vm0 = vcmask 64512   ;;  %v77_v11 = vld [vmem:[%s1610_s0 + $0x8] sm:$0xff] }
  0x4d   :  { %298 = vmatprep.subr.bf16.mxu1 %v1236_v4  ;;  %v1241_v7 = vld [vmem:[#allocation3 + $0x40] ss:$16 sps:$4 sm:$0xff]   ;;  %v1242_v8 = vld [vmem:[#allocation3 + $0x64] ss:$16 sps:$4 sm:$0xff]   ;;  %80 = vst.msk [vmem:[#allocation2 + $0x8] sm:$0xff] %vm78_vm0, %v77_v11  ;;  %v1380_v11 = vld [vmem:[#allocation7 + $0x8] sm:$0xff]  }
  0x4e   :  { %v1244_v9 = vld [vmem:[#allocation3 + $0x60] ss:$16 sps:$4 sm:$0xff]   ;;  %v1245_v12 = vld [vmem:[#allocation3 + $0x84] ss:$16 sps:$4 sm:$0xff]   ;;  %v1259_v27 = vld [vmem:[#allocation3 + $0xc] ss:$16 sps:$4 sm:$0xff]  }
  0x4f   :  { %v76_v10 = vld [vmem:[%s1610_s0] sm:$0xff]  ;;  %v1281_v19 = vld [vmem:[#allocation5 + $0x4] ss:$8 sps:$4 sm:$0xff]   ;;  %v1283_v20 = vld [vmem:[#allocation5] ss:$8 sps:$4 sm:$0xff]  }
  0x50   :  { %299 = vmatpush1.bf16.msra.mxu1 %v1238_v5  ;;  %79 = vst.msk [vmem:[#allocation2] sm:$0xff] %vm78_vm0, %v76_v10  ;;  %v1247_v13 = vld [vmem:[#allocation3 + $0x80] ss:$16 sps:$4 sm:$0xff]   ;;  %v1248_v14 = vld [vmem:[#allocation3 + $0xa4] ss:$16 sps:$4 sm:$0xff]   ;;  %786 = vmatprep.subr.bf16.mxu0 %v1281_v19  ;;  %v1379_v10 = vld [vmem:[#allocation7 + $0x48] sm:$0xff]   ;;  %v120_v19 = vlaneseq }
  0x51   :  { %300 = vmatprep.subr.bf16.mxu1 %v1239_v6  ;;  %v1250_v15 = vld [vmem:[#allocation3 + $0xa0] ss:$16 sps:$4 sm:$0xff]   ;;  %v1251_v16 = vld [vmem:[#allocation3 + $0xc4] ss:$16 sps:$4 sm:$0xff]   ;;  %787 = vmatpush1.bf16.msra.mxu0 %v1283_v20  ;;  %v1257_v30 = vld [vmem:[#allocation3 + $0x8] ss:$16 sps:$4 sm:$0xff]  }
  0x52   :  { %v1253_v17 = vld [vmem:[#allocation3 + $0xc0] ss:$16 sps:$4 sm:$0xff]   ;;  %v1254_v18 = vld [vmem:[#allocation3 + $0xe4] ss:$16 sps:$4 sm:$0xff]   ;;  %v1262_v31 = vld [vmem:[#allocation3 + $0x2c] ss:$16 sps:$4 sm:$0xff]  }
  0x53   :  { %v1284_v21 = vld [vmem:[#allocation5 + $0x14] ss:$8 sps:$4 sm:$0xff]   ;;  %v1256_v22 = vld [vmem:[#allocation3 + $0xe0] ss:$16 sps:$4 sm:$0xff]   ;;  %v1287_v26 = vld [vmem:[#allocation5 + $0x24] ss:$8 sps:$4 sm:$0xff]  }
  0x54   :  { %301 = vmatpush1.bf16.msra.mxu1 %v1241_v7  ;;  %v1286_v24 = vld [vmem:[#allocation5 + $0x10] ss:$8 sps:$4 sm:$0xff]   ;;  %788 = vmatprep.subr.bf16.mxu0 %v1284_v21  ;;  %v1289_v29 = vld [vmem:[#allocation5 + $0x20] ss:$8 sps:$4 sm:$0xff]   ;;  %v1290_v32 = vld [vmem:[#allocation5 + $0x34] ss:$8 sps:$4 sm:$0xff]  }
  0x55   :  { %302 = vmatprep.subr.bf16.mxu1 %v1242_v8  ;;  %v86_v25 = vld [vmem:[#allocation2 + $0x8] sm:$0xff]  ;;  %789 = vmatpush1.bf16.msra.mxu0 %v1286_v24  ;;  %v1293_v35 = vld [vmem:[#allocation5 + $0x44] ss:$8 sps:$4 sm:$0xff]   ;;  %v1295_v37 = vld [vmem:[#allocation5 + $0x40] ss:$8 sps:$4 sm:$0xff]   ;;  %v1593_v20 = vshrl.u32 %v120_v19, 7 }
  0x56   :  { %790 = vmatprep.subr.bf16.mxu0 %v1287_v26  ;;  %v1292_v33 = vld [vmem:[#allocation5 + $0x30] ss:$8 sps:$4 sm:$0xff]   ;;  %v1265_v36 = vld [vmem:[#allocation3 + $0x4c] ss:$16 sps:$4 sm:$0xff]   ;;  %v1301_v45 = vld [vmem:[#allocation5 + $0x60] ss:$8 sps:$4 sm:$0xff]  }
  0x57   :  { %v85_v23 = vld [vmem:[#allocation2] sm:$0xff]  ;;  %v1260_v34 = vld [vmem:[#allocation3 + $0x28] ss:$16 sps:$4 sm:$0xff]   ;;  %v1268_v40 = vld [vmem:[#allocation3 + $0x6c] ss:$16 sps:$4 sm:$0xff]   ;;  %v122_v21 = vsub.s32 0, %v1593_v20 }
  0x58   :  { %303 = vmatpush1.bf16.msra.mxu1 %v1244_v9  ;;  %v1588_v28 = vpack.c.bf16 %v86_v25, %v85_v23  ;;  %v1263_v38 = vld [vmem:[#allocation3 + $0x48] ss:$16 sps:$4 sm:$0xff]   ;;  %v1296_v39 = vld [vmem:[#allocation5 + $0x54] ss:$8 sps:$4 sm:$0xff]   ;;  %v1299_v43 = vld [vmem:[#allocation5 + $0x64] ss:$8 sps:$4 sm:$0xff]  }
  0x59   :  { %304 = vmatprep.subr.bf16.mxu1 %v1245_v12  ;;  %791 = vmatpush1.bf16.msra.mxu0 %v1289_v29  ;;  %v1266_v41 = vld [vmem:[#allocation3 + $0x68] ss:$16 sps:$4 sm:$0xff]   ;;  %v1271_v44 = vld [vmem:[#allocation3 + $0x8c] ss:$16 sps:$4 sm:$0xff]   ;;  %v1377_v8 = vld [vmem:[#allocation7 + $0x40] sm:$0xff]  }
  0x5a   :  { %792 = vmatprep.subr.bf16.mxu0 %v1290_v32  ;;  %v1298_v42 = vld [vmem:[#allocation5 + $0x50] ss:$8 sps:$4 sm:$0xff]   ;;  %v1302_v47 = vld [vmem:[#allocation5 + $0x74] ss:$8 sps:$4 sm:$0xff]   ;;  %v1305_v51 = vld [vmem:[#allocation5 + $0x84] ss:$8 sps:$4 sm:$0xff]  }
  0x5b   :  { %v1269_v46 = vld [vmem:[#allocation3 + $0x88] ss:$16 sps:$4 sm:$0xff]   ;;  %v1274_v48 = vld [vmem:[#allocation3 + $0xac] ss:$16 sps:$4 sm:$0xff]   ;;  %v1378_v9 = vld [vmem:[#allocation7] sm:$0xff]  }
  0x5c   :  { %305 = vmatpush1.bf16.msra.mxu1 %v1247_v13  ;;  %v1304_v49 = vld [vmem:[#allocation5 + $0x70] ss:$8 sps:$4 sm:$0xff]   ;;  %v1277_v52 = vld [vmem:[#allocation3 + $0xcc] ss:$16 sps:$4 sm:$0xff]   ;;  %v1307_v53 = vld [vmem:[#allocation5 + $0x80] ss:$8 sps:$4 sm:$0xff]  }
  0x5d   :  { %306 = vmatprep.subr.bf16.mxu1 %v1248_v14  ;;  %793 = vmatpush1.bf16.msra.mxu0 %v1292_v33  ;;  %v1272_v50 = vld [vmem:[#allocation3 + $0xa8] ss:$16 sps:$4 sm:$0xff]   ;;  %v1308_v55 = vld [vmem:[#allocation5 + $0x94] ss:$8 sps:$4 sm:$0xff]   ;;  %v1311_v59 = vld [vmem:[#allocation5 + $0xa4] ss:$8 sps:$4 sm:$0xff]  }
  0x5e   :  { %794 = vmatprep.subr.bf16.mxu0 %v1293_v35  ;;  %v1275_v54 = vld [vmem:[#allocation3 + $0xc8] ss:$16 sps:$4 sm:$0xff]   ;;  %v1280_v56 = vld [vmem:[#allocation3 + $0xec] ss:$16 sps:$4 sm:$0xff]   ;;  %v1381_v12 = vld [vmem:[#allocation7 + $0x50] sm:$0xff]  }
  0x5f   :  { %v1310_v57 = vld [vmem:[#allocation5 + $0x90] ss:$8 sps:$4 sm:$0xff]   ;;  %v1313_v60 = vld [vmem:[#allocation5 + $0xa0] ss:$8 sps:$4 sm:$0xff]   ;;  %v1314_v61 = vld [vmem:[#allocation5 + $0xb4] ss:$8 sps:$4 sm:$0xff]  }
  0x60   :  { %307 = vmatpush1.bf16.msra.mxu1 %v1250_v15  ;;  %v1278_v58 = vld [vmem:[#allocation3 + $0xe8] ss:$16 sps:$4 sm:$0xff]   ;;  %v1317_v63 = vld [vmem:[#allocation5 + $0xc4] ss:$8 sps:$4 sm:$0xff]   ;;  %v1320_v1 = vld [vmem:[#allocation5 + $0xd4] ss:$8 sps:$4 sm:$0xff]  }
  0x61   :  { %308 = vmatprep.subr.bf16.mxu1 %v1251_v16  ;;  %795 = vmatpush1.bf16.msra.mxu0 %v1295_v37  ;;  %v1316_v62 = vld [vmem:[#allocation5 + $0xb0] ss:$8 sps:$4 sm:$0xff]   ;;  %v1323_v3 = vld [vmem:[#allocation5 + $0xe4] ss:$8 sps:$4 sm:$0xff]   ;;  %v1325_v4 = vld [vmem:[#allocation5 + $0xe0] ss:$8 sps:$4 sm:$0xff]  }
  0x62   :  { %796 = vmatprep.subr.bf16.mxu0 %v1296_v39  ;;  %v1322_v2 = vld [vmem:[#allocation5 + $0xd0] ss:$8 sps:$4 sm:$0xff]   ;;  %v1326_v5 = vld [vmem:[#allocation5 + $0xf4] ss:$8 sps:$4 sm:$0xff]   ;;  %v1331_v7 = vld [vmem:[#allocation5 + $0x104] ss:$8 sps:$4 sm:$0xff]  }
  0x63   :  { %v1328_v6 = vld [vmem:[#allocation5 + $0xf0] ss:$8 sps:$4 sm:$0xff]   ;;  %v1385_v16 = vld [vmem:[#allocation7 + $0x60] sm:$0xff]   ;;  %v1598_v23 = vld [vmem:[#allocation8 + $0x8] sm:$0xff] }
  0x64   :  { %309 = vmatpush1.bf16.msra.mxu1 %v1253_v17  ;;  %v1382_v13 = vld [vmem:[#allocation7 + $0x10] sm:$0xff]   ;;  %v1383_v14 = vld [vmem:[#allocation7 + $0x58] sm:$0xff]   ;;  %v1386_v17 = vld [vmem:[#allocation7 + $0x20] sm:$0xff]   ;;  %v127_v25 = vrot.slane %v1598_v23, %v122_v21 }
  0x65   :  { %310 = vmatprep.subr.bf16.mxu1 %v1254_v18  ;;  %797 = vmatpush1.bf16.msra.mxu0 %v1298_v42  ;;  %v1384_v15 = vld [vmem:[#allocation7 + $0x18] sm:$0xff]   ;;  %v1387_v18 = vld [vmem:[#allocation7 + $0x68] sm:$0xff]  }
  0x66   :  { %798 = vmatprep.subr.bf16.mxu0 %v1299_v43  ;;  %v1332_v42 = vld [vmem:[#allocation5 + $0x110] ss:$8 sps:$4 sm:$0xff]   ;;  %v1337_v43 = vld [vmem:[#allocation5 + $0x124] ss:$8 sps:$4 sm:$0xff]   ;;  %v1370_v19 = vld [vmem:[#allocation5 + $0x1d4] ss:$8 sps:$4 sm:$0xff]  }
  0x68   :  { %311 = vmatpush1.bf16.msra.mxu1 %v1256_v22  ;;  %v1596_v22 = vld [vmem:[#allocation8] sm:$0xff] }
  0x69   :  { %339 = vmatprep.subr.bf16.mxu1 %v1259_v27  ;;  %799 = vmatpush1.bf16.msra.mxu0 %v1301_v45  ;;  %v123_v24 = vrot.slane %v1596_v22, %v122_v21  ;;  %v1340_v45 = vld [vmem:[#allocation5 + $0x134] ss:$8 sps:$4 sm:$0xff]  }
  0x6a   :  { %800 = vmatprep.subr.bf16.mxu0 %v1302_v47  ;;  %v1343_v47 = vld [vmem:[#allocation5 + $0x144] ss:$8 sps:$4 sm:$0xff]  }
  0x6b   :  { %329 = vmatmul.mubr.bf16.vlgmr.msra.gmra.mrb[0].mxu1 %v1588_v28 }
  0x6c   :  { %340 = vmatpush1.bf16.msra.mxu1 %v1257_v30  ;;  %371 = vmatprep.mubr.bf16.mxu1 %v1501_v0  ;;  %v1319_v0 = vld [vmem:[#allocation5 + $0xc0] ss:$8 sps:$4 sm:$0xff]  }
  0x6d   :  { %341 = vmatprep.subr.bf16.mxu1 %v1262_v31  ;;  %801 = vmatpush1.bf16.msra.mxu0 %v1304_v49  ;;  %v1346_v49 = vld [vmem:[#allocation5 + $0x154] ss:$8 sps:$4 sm:$0xff]  }
  0x6e   :  { %802 = vmatprep.subr.bf16.mxu0 %v1305_v51  ;;  %v84_v51 = vld [vmem:[#allocation8 + $0x18] sm:$0xff] }
  0x70   :  { %342 = vmatpush1.bf16.msra.mxu1 %v1260_v34 }
  0x71   :  { %343 = vmatprep.subr.bf16.mxu1 %v1265_v36  ;;  %803 = vmatpush1.bf16.msra.mxu0 %v1307_v53  ;;  %v1349_v53 = vld [vmem:[#allocation5 + $0x164] ss:$8 sps:$4 sm:$0xff]  }
  0x72   :  { %804 = vmatprep.subr.bf16.mxu0 %v1308_v55  ;;  %v135_v55 = vrot.slane %v84_v51, %v122_v21 }
  0x74   :  { %344 = vmatpush1.bf16.msra.mxu1 %v1263_v38 }
  0x75   :  { %345 = vmatprep.subr.bf16.mxu1 %v1268_v40  ;;  %805 = vmatpush1.bf16.msra.mxu0 %v1310_v57  ;;  %v1329_v40 = vld [vmem:[#allocation5 + $0x100] ss:$8 sps:$4 sm:$0xff]  }
  0x76   :  { %806 = vmatprep.subr.bf16.mxu0 %v1311_v59 }
  0x78   :  { %346 = vmatpush1.bf16.msra.mxu1 %v1266_v41  ;;  %v1334_v41 = vld [vmem:[#allocation5 + $0x114] ss:$8 sps:$4 sm:$0xff]  }
  0x79   :  { %347 = vmatprep.subr.bf16.mxu1 %v1271_v44  ;;  %807 = vmatpush1.bf16.msra.mxu0 %v1313_v60  ;;  %v1335_v44 = vld [vmem:[#allocation5 + $0x120] ss:$8 sps:$4 sm:$0xff]  }
  0x7a   :  { %808 = vmatprep.subr.bf16.mxu0 %v1314_v61 }
  0x7c   :  { %348 = vmatpush1.bf16.msra.mxu1 %v1269_v46  ;;  %v1338_v46 = vld [vmem:[#allocation5 + $0x130] ss:$8 sps:$4 sm:$0xff]  }
  0x7d   :  { %349 = vmatprep.subr.bf16.mxu1 %v1274_v48  ;;  %809 = vmatpush1.bf16.msra.mxu0 %v1316_v62  ;;  %v1341_v48 = vld [vmem:[#allocation5 + $0x140] ss:$8 sps:$4 sm:$0xff]  }
  0x7e   :  { %810 = vmatprep.subr.bf16.mxu0 %v1317_v63 }
  0x80   :  { %350 = vmatpush1.bf16.msra.mxu1 %v1272_v50  ;;  %v83_v50 = vld [vmem:[#allocation8 + $0x10] sm:$0xff] }
  0x81   :  { %351 = vmatprep.subr.bf16.mxu1 %v1277_v52  ;;  %811 = vmatpush1.bf16.msra.mxu0 %v1319_v0  ;;  %v1344_v52 = vld [vmem:[#allocation5 + $0x150] ss:$8 sps:$4 sm:$0xff]  }
  0x82   :  { %812 = vmatprep.subr.bf16.mxu0 %v1320_v1 }
  0x84   :  { %352 = vmatpush1.bf16.msra.mxu1 %v1275_v54  ;;  %v131_v54 = vrot.slane %v83_v50, %v122_v21  ;;  %v1368_v21 = vld [vmem:[#allocation5 + $0x1d0] ss:$8 sps:$4 sm:$0xff]   ;;  %v912_v50 = vsub.s32 2, %v1593_v20 }
  0x85   :  { %353 = vmatprep.subr.bf16.mxu1 %v1280_v56  ;;  %813 = vmatpush1.bf16.msra.mxu0 %v1322_v2  ;;  %v1347_v56 = vld [vmem:[#allocation5 + $0x160] ss:$8 sps:$4 sm:$0xff]   ;;  %v1350_v2 = vld [vmem:[#allocation5 + $0x170] ss:$8 sps:$4 sm:$0xff]  }
  0x86   :  { %814 = vmatprep.subr.bf16.mxu0 %v1323_v3 }
  0x88   :  { %354 = vmatpush1.bf16.msra.mxu1 %v1278_v58  ;;  %v1352_v58 = vld [vmem:[#allocation5 + $0x174] ss:$8 sps:$4 sm:$0xff]  }
  0x89   :  { %815 = vmatpush1.bf16.msra.mxu0 %v1325_v4  ;;  %1191 = vmatprep.subr.bf16.mxu1 %v1377_v8 }
  0x8a   :  { %816 = vmatprep.subr.bf16.mxu0 %v1326_v5  ;;  %v1355_v5 = vld [vmem:[#allocation5 + $0x184] ss:$8 sps:$4 sm:$0xff]  }
  0x8b   :  { %372 = vmatmul.mubr.bf16.vlgmr.msra.gmra.mrb[4].mxu1 %v1588_v28 }
  0x8c   :  { %1192 = vmatpush3.bf16.msra.mxu1 %v1378_v9  ;;  %v1353_v9 = vld [vmem:[#allocation5 + $0x180] ss:$8 sps:$4 sm:$0xff]  }
  0x8d   :  { %817 = vmatpush1.bf16.msra.mxu0 %v1328_v6  ;;  %1193 = vmatprep.subr.bf16.mxu1 %v1379_v10 }
  0x8e   :  { %829 = vmatprep.subr.bf16.mxu0 %v1331_v7 }
  0x90   :  { %1194 = vmatpush3.bf16.msra.mxu1 %v1380_v11  ;;  %v1358_v11 = vld [vmem:[#allocation5 + $0x194] ss:$8 sps:$4 sm:$0xff]  }
  0x91   :  { %1195 = vmatprep.subr.bf16.mxu1 %v1381_v12  ;;  %v1356_v12 = vld [vmem:[#allocation5 + $0x190] ss:$8 sps:$4 sm:$0xff]  }
  0x94   :  { %1196 = vmatpush3.bf16.msra.mxu1 %v1382_v13  ;;  %v1361_v13 = vld [vmem:[#allocation5 + $0x1a4] ss:$8 sps:$4 sm:$0xff]  }
  0x95   :  { %1197 = vmatprep.subr.bf16.mxu1 %v1383_v14  ;;  %v1359_v14 = vld [vmem:[#allocation5 + $0x1a0] ss:$8 sps:$4 sm:$0xff]  }
  0x98   :  { %1198 = vmatpush3.bf16.msra.mxu1 %v1384_v15  ;;  %v1364_v15 = vld [vmem:[#allocation5 + $0x1b4] ss:$8 sps:$4 sm:$0xff]  }
  0x99   :  { %1199 = vmatprep.subr.bf16.mxu1 %v1385_v16  ;;  %v1362_v16 = vld [vmem:[#allocation5 + $0x1b0] ss:$8 sps:$4 sm:$0xff]  }
  0x9c   :  { %1200 = vmatpush3.bf16.msra.mxu1 %v1386_v17  ;;  %v1367_v17 = vld [vmem:[#allocation5 + $0x1c4] ss:$8 sps:$4 sm:$0xff]  }
  0x9d   :  { %1201 = vmatprep.subr.bf16.mxu1 %v1387_v18  ;;  %v1365_v18 = vld [vmem:[#allocation5 + $0x1c0] ss:$8 sps:$4 sm:$0xff]  }
 0x13e   :  { %v330_v26 = vpop.f32.mrb[0].mxu1 }
 0x13f   :  { %v331_v27 = vadd.f32 %v330_v26, %v123_v24  ;;  %v332_v28 = vpop.f32.mrb[1].mxu1  ;;  %v1376_v26 = vld [vmem:[#allocation5 + $0x1f4] ss:$8 sps:$4 sm:$0xff]  }
 0x140   :  { %v333_v29 = vadd.f32 %v332_v28, %v127_v25  ;;  %v334_v30 = vpop.f32.mrb[2].mxu1  ;;  %v1388_v28 = vld [vmem:[#allocation7 + $0x28] sm:$0xff]  }
 0x141   :  { %v335_v31 = vadd.f32 %v334_v30, %v123_v24  ;;  %v336_v32 = vpop.f32.mrb[3].mxu1  ;;  %v382_v34 = vmax.f32 %v331_v27, 0.0  ;;  %v1373_v24 = vld [vmem:[#allocation5 + $0x1e4] ss:$8 sps:$4 sm:$0xff]   ;;  %v1374_v27 = vld [vmem:[#allocation5 + $0x1f0] ss:$8 sps:$4 sm:$0xff]   ;;  %1202 = vmatpush3.bf16.msra.mxu1 %v1388_v28 }
 0x142   :  { %v337_v33 = vadd.f32 %v336_v32, %v127_v25  ;;  %v383_v36 = vmax.f32 %v333_v29, 0.0  ;;  %v1371_v25 = vld [vmem:[#allocation5 + $0x1e0] ss:$8 sps:$4 sm:$0xff]   ;;  %v1389_v29 = vld [vmem:[#allocation7 + $0x70] sm:$0xff]   ;;  %v1392_v32 = vld [vmem:[#allocation7 + $0x38] sm:$0xff]  }
 0x143   :  { %v386_v35 = vmax.f32 %v335_v31, 0.0  ;;  %v1390_v30 = vld [vmem:[#allocation7 + $0x30] sm:$0xff]   ;;  %1203 = vmatprep.subr.bf16.mxu1 %v1389_v29  ;;  %v1391_v31 = vld [vmem:[#allocation7 + $0x78] sm:$0xff]  }
 0x144   :  { %v387_v37 = vmax.f32 %v337_v33, 0.0  ;;  %v460_v33 = vsub.s32 1, %v1593_v20 }
 0x145   :  { %v390_v38 = vpack.c.bf16 %v386_v35, %v382_v34  ;;  %1204 = vmatpush3.bf16.msra.mxu1 %v1390_v30 }
 0x146   :  { %v391_v39 = vpack.c.bf16 %v387_v37, %v383_v36  ;;  %1205 = vmatprep.subr.bf16.mxu1 %v1391_v31  ;;  %v461_v34 = vrot.slane %v1596_v22, %v460_v33  ;;  %v465_v35 = vrot.slane %v1598_v23, %v460_v33  ;;  %v913_v23 = vrot.slane %v1596_v22, %v912_v50 }
 0x148   :  { %818 = vmatprep.mubr.bf16.mxu0 %v391_v39 }
 0x149   :  { %819 = vmatmul.mubr.bf16.vlgmr.msra.gmra.mrb[0].mxu0 %v390_v38  ;;  %1206 = vmatpush3.bf16.msra.mxu1 %v1392_v32 }
 0x14a   :  { %830 = vmatpush1.bf16.msra.mxu0 %v1329_v40 }
 0x14b   :  { %831 = vmatprep.subr.bf16.mxu0 %v1334_v41 }
 0x14e   :  { %832 = vmatpush1.bf16.msra.mxu0 %v1332_v42 }
 0x14f   :  { %833 = vmatprep.subr.bf16.mxu0 %v1337_v43 }
 0x152   :  { %834 = vmatpush1.bf16.msra.mxu0 %v1335_v44 }
 0x153   :  { %835 = vmatprep.subr.bf16.mxu0 %v1340_v45 }
 0x156   :  { %836 = vmatpush1.bf16.msra.mxu0 %v1338_v46 }
 0x157   :  { %837 = vmatprep.subr.bf16.mxu0 %v1343_v47 }
 0x15a   :  { %838 = vmatpush1.bf16.msra.mxu0 %v1341_v48 }
 0x15b   :  { %839 = vmatprep.subr.bf16.mxu0 %v1346_v49 }
 0x15e   :  { %840 = vmatpush1.bf16.msra.mxu0 %v1344_v52  ;;  %v373_v57 = vpop.f32.mrb[4].mxu1 }
 0x15f   :  { %841 = vmatprep.subr.bf16.mxu0 %v1349_v53  ;;  %v374_v59 = vadd.f32 %v373_v57, %v131_v54  ;;  %v375_v60 = vpop.f32.mrb[5].mxu1 }
 0x160   :  { %v376_v61 = vadd.f32 %v375_v60, %v135_v55  ;;  %v377_v62 = vpop.f32.mrb[6].mxu1 }
 0x161   :  { %v384_v63 = vmax.f32 %v374_v59, 0.0  ;;  %v378_v0 = vadd.f32 %v377_v62, %v131_v54  ;;  %v379_v1 = vpop.f32.mrb[7].mxu1 }
 0x162   :  { %842 = vmatpush1.bf16.msra.mxu0 %v1347_v56  ;;  %v385_v3 = vmax.f32 %v376_v61, 0.0  ;;  %v380_v4 = vadd.f32 %v379_v1, %v135_v55 }
 0x163   :  { %843 = vmatprep.subr.bf16.mxu0 %v1352_v58  ;;  %v388_v6 = vmax.f32 %v378_v0, 0.0 }
 0x164   :  { %v389_v7 = vmax.f32 %v380_v4, 0.0 }
 0x165   :  { %v392_v8 = vpack.c.bf16 %v388_v6, %v384_v63 }
 0x166   :  { %844 = vmatpush1.bf16.msra.mxu0 %v1350_v2  ;;  %v393_v10 = vpack.c.bf16 %v389_v7, %v385_v3 }
 0x167   :  { %845 = vmatprep.subr.bf16.mxu0 %v1355_v5 }
 0x168   :  { %861 = vmatprep.mubr.bf16.mxu0 %v393_v10 }
 0x16a   :  { %846 = vmatpush1.bf16.msra.mxu0 %v1353_v9 }
 0x16b   :  { %847 = vmatprep.subr.bf16.mxu0 %v1358_v11 }
 0x16e   :  { %848 = vmatpush1.bf16.msra.mxu0 %v1356_v12 }
 0x16f   :  { %849 = vmatprep.subr.bf16.mxu0 %v1361_v13 }
 0x172   :  { %850 = vmatpush1.bf16.msra.mxu0 %v1359_v14 }
 0x173   :  { %851 = vmatprep.subr.bf16.mxu0 %v1364_v15 }
 0x176   :  { %852 = vmatpush1.bf16.msra.mxu0 %v1362_v16 }
 0x177   :  { %853 = vmatprep.subr.bf16.mxu0 %v1367_v17 }
 0x17a   :  { %854 = vmatpush1.bf16.msra.mxu0 %v1365_v18 }
 0x17b   :  { %855 = vmatprep.subr.bf16.mxu0 %v1370_v19 }
 0x17e   :  { %856 = vmatpush1.bf16.msra.mxu0 %v1368_v21 }
 0x17f   :  { %857 = vmatprep.subr.bf16.mxu0 %v1373_v24 }
 0x182   :  { %858 = vmatpush1.bf16.msra.mxu0 %v1371_v25 }
 0x183   :  { %859 = vmatprep.subr.bf16.mxu0 %v1376_v26 }
 0x186   :  { %860 = vmatpush1.bf16.msra.mxu0 %v1374_v27 }
 0x189   :  { %862 = vmatmul.mubr.bf16.vlgmr.msra.gmra.mrb[0].mxu0 %v392_v8 }
 0x25c   :  { %v863_v36 = vpop.f32.mrb[0].mxu0 }
 0x25d   :  { %v1213_v37 = vadd.f32 %v863_v36, %v461_v34  ;;  %v865_v38 = vpop.f32.mrb[1].mxu0 }
 0x25e   :  { %v1214_v39 = vadd.f32 %v865_v38, %v465_v35  ;;  %v867_v40 = vpop.f32.mrb[2].mxu0 }
 0x25f   :  { %v1215_v41 = vadd.f32 %v867_v40, %v461_v34  ;;  %v869_v42 = vpop.f32.mrb[3].mxu0  ;;  %v872_v44 = vmax.f32 %v1213_v37, 0.0 }
 0x260   :  { %v1216_v43 = vadd.f32 %v869_v42, %v465_v35  ;;  %v873_v46 = vmax.f32 %v1214_v39, 0.0 }
 0x261   :  { %v874_v45 = vmax.f32 %v1215_v41, 0.0 }
 0x262   :  { %v875_v47 = vmax.f32 %v1216_v43, 0.0 }
 0x263   :  { %v876_v48 = vpack.c.bf16 %v874_v45, %v872_v44 }
 0x264   :  { %v877_v49 = vpack.c.bf16 %v875_v47, %v873_v46 }
 0x266   :  { %1042 = vmatprep.mubr.bf16.mxu1 %v877_v49 }
 0x267   :  { %1043 = vmatmul.mubr.bf16.vlgmr.msra.gmra.mrb[8].mxu1 %v876_v48 }
 0x33a   :  { %v1207_v51 = vpop.f32.mrb[8].mxu1 }
 0x33b   :  { %v1208_v52 = vpop.f32.mrb[9].mxu1 }
 0x33c   :  { %v1209_v53 = vadd.f32 %v1208_v52, %v1207_v51  ;;  %v1210_v54 = vpop.f32.mrb[10].mxu1 }
 0x33d   :  { %v1211_v55 = vpop.f32.mrb[11].mxu1 }
 0x33e   :  { %v1045_v56 = vadd.f32 %v1209_v53, %v913_v23  ;;  %v1212_v57 = vadd.f32 %v1211_v55, %v1210_v54 }
 0x340   :  { %v1048_v58 = vadd.f32 %v1212_v57, %v913_v23  ;;  %1393 = vtanh.f32 %v1045_v56 }
 0x342   :  { %1395 = vtanh.f32 %v1048_v58 }
 0x34a   :  { %v1394_v59 = vpop.eup %1393 }
 0x34c   :  { %v1396_v60 = vpop.eup %1395 }
 0x34d   :  { %v1189_v61 = vpack.c.bf16 %v1396_v60, %v1394_v59 }
 0x34f   :  { %1190 = vst [vmem:[%s1615_s5] sm:$0xff] %v1189_v61  }
 0x350   :  { %1067 = vsyncpa [#allocation4], 1 }
 0x351   :  { %1068 = vsyncpa [#allocation6], 1 }
 0x352   :  { %1069 = vsyncpa [#allocation9], 1 }

</bundles_post_ra>
